<compile_context>
chip_gen: v7x
topology: tpu7x:2x2x1
jax: 0.10.0
libtpu: 0.0.40
codegen_flags: <defaults>
</compile_context>

<pallas_src>
import functools
import math

import jax
import jax.numpy as jnp
from jax.experimental import pallas as pl
from jax.experimental.pallas import tpu as pltpu

NEG_INF = -1e30  # finite stand-in for float('-inf'); identical math with add_zero_attn
_EPS = 1e-5

# ---------------------------------------------------------------------------
# Per-generation knobs (VMEM scope / max tile widths)
# ---------------------------------------------------------------------------
try:
    _VMEM_BYTES = int(pltpu.get_tpu_info().vmem_capacity_bytes)
except Exception:  # pragma: no cover - conservative fallback
    _VMEM_BYTES = 64 * 1024 * 1024
_BIG_VMEM = _VMEM_BYTES >= 100 * 1024 * 1024          # v5e/v6e (128 MiB) vs v7x (64 MiB)
_VMEM_LIMIT = int(min(_VMEM_BYTES, 128 * 1024 * 1024) // 2)

_ROW_TILES = ((1024,) if _BIG_VMEM else ()) + (512, 256, 128, 64, 32, 16, 8)
_COL_TILES = ((1024,) if _BIG_VMEM else ()) + (512, 256, 128)
_XROW_TILES = (256, 128, 64, 32, 16, 8)               # cross-attn query rows (keeps rel-masks bounded)
_FRAME_TILES = (32, 16, 8, 4, 2, 1)


def _gelu_tanh(x):
    # TODO(synk): PyTorch nn.GELU() default is erf-based; tanh approximation is
    # used (no guaranteed erf lowering in Mosaic); diff ~1e-3.
    c = math.sqrt(2.0 / math.pi)
    return 0.5 * x * (1.0 + jnp.tanh(c * (x + 0.044715 * x * x * x)))


def _pick_tile(dim, candidates, min_steps=1):
    # TODO(synk): non-divisible dims fall back to the largest divisor / full dim;
    # padding + pl.cdiv grids would be needed for arbitrary real-world shapes.
    fallback = None
    for c in candidates:
        if c <= dim and dim % c == 0:
            if dim // c >= min_steps:
                return c
            if fallback is None:
                fallback = c
    return fallback if fallback is not None else dim


def _const_spec(shape, index_map):
    """BlockSpec for a constant-index block: single-buffer it (no double-buffer VMEM)."""
    try:
        return pl.BlockSpec(shape, index_map, pipeline_mode=pl.Buffered(1))
    except Exception:  # pragma: no cover - older jax without pipeline_mode
        return pl.BlockSpec(shape, index_map)


def _ln2d(y, g, b, eps=_EPS):
    mu = jnp.mean(y, axis=-1, keepdims=True)
    var = jnp.mean((y - mu) ** 2, axis=-1, keepdims=True)
    return (y - mu) * jax.lax.rsqrt(var + eps) * g + b


# ---------------------------------------------------------------------------
# Tiled linear: (M,K) @ (K,N) + b [+GELU]; bf16 operands, f32 accumulator
# ---------------------------------------------------------------------------
def _linear_kernel(x_ref, w_ref, b_ref, o_ref, acc_ref, *, activation):
    @pl.when(pl.program_id(2) == 0)
    def _():
        acc_ref[...] = jnp.zeros_like(acc_ref)

    acc_ref[...] += jnp.dot(x_ref[...].astype(jnp.bfloat16), w_ref[...],
                            preferred_element_type=jnp.float32)

    @pl.when(pl.program_id(2) == pl.num_programs(2) - 1)
    def _():
        y = acc_ref[...] + b_ref[...]
        if activation == "gelu":
            y = _gelu_tanh(y)
        o_ref[...] = y.astype(o_ref.dtype)


def linear(x, w, b=None, out_dtype=jnp.float32, activation=None):
    M, K = x.shape
    N = w.shape[1]
    if b is None:
        b = jnp.zeros((1, N), jnp.float32)
    tm = _pick_tile(M, _ROW_TILES, min_steps=2)
    tn = _pick_tile(N, _COL_TILES)
    tk = _pick_tile(K, _COL_TILES)
    kern = functools.partial(_linear_kernel, activation=activation)
    return pl.pallas_call(
        kern,
        out_shape=jax.ShapeDtypeStruct((M, N), out_dtype),
        grid=(M // tm, N // tn, K // tk),
        in_specs=[
            pl.BlockSpec((tm, tk), lambda i, j, k: (i, k)),
            pl.BlockSpec((tk, tn), lambda i, j, k: (k, j)),
            pl.BlockSpec((1, tn), lambda i, j, k: (0, j)),
        ],
        out_specs=pl.BlockSpec((tm, tn), lambda i, j, k: (i, j)),
        scratch_shapes=[pltpu.VMEM((tm, tn), jnp.float32)],
        compiler_params=pltpu.CompilerParams(
            dimension_semantics=("parallel", "parallel", "arbitrary"),
            vmem_limit_bytes=_VMEM_LIMIT),
    )(x, w, b)


# ---------------------------------------------------------------------------
# Cross-attention block (queries = unknowns, keys/values = trajectories)
#   - Q projection fused in-kernel (head-major weights, no lane slices)
#   - additive mask + relative-temporal bias built in-kernel from O(L+S) vectors
#   - S axis tiled with online softmax; add_zero_attn via (m0=0, l0=1) init
#   - out-projection + residual + LayerNorm fused into the epilogue
# ---------------------------------------------------------------------------
def _cross_attn_kernel(x_ref, wq_ref, bq_ref, k_ref, v_ref, kp_ref, tt_ref, tf_ref,
                       ut_ref, uf_ref, tab_ref, wo_ref, bo_ref, g_ref, b_ref,
                       o_ref, q_scr, m_scr, l_scr, acc_scr,
                       *, heads, head_dim, t_max, scale, training, eps):
    sj = pl.program_id(1)
    tl = x_ref.shape[0]
    C = heads * head_dim

    @pl.when(sj == 0)
    def _init():
        xb = x_ref[...].astype(jnp.bfloat16)
        for h in range(heads):
            qh = jnp.dot(xb, wq_ref[h], preferred_element_type=jnp.float32) + bq_ref[h]
            q_scr[h] = qh.astype(jnp.bfloat16)
        # nn.MultiheadAttention(add_zero_attn=True): one extra zero-logit/zero-value
        # slot => online softmax init m=0, l=1, acc=0.
        m_scr[...] = jnp.zeros(m_scr.shape, jnp.float32)
        l_scr[...] = jnp.ones(l_scr.shape, jnp.float32)
        acc_scr[...] = jnp.zeros(acc_scr.shape, jnp.float32)

    # head-independent additive mask for this (tl, ts) tile, built from vectors
    kp = kp_ref[...]                                            # (1, ts) f32
    if training:
        base = kp + jnp.where(tf_ref[...] > uf_ref[...], NEG_INF, 0.0)
    else:
        base = kp
    # relative temporal index (torch negative-index wrap == +t_max when negative)
    rel = ut_ref[...] - tt_ref[...]                             # (tl, ts) int32
    idx = jnp.where(rel < 0, rel + t_max, rel)
    # compare once per t (head-independent), reuse as f32 masks across heads
    rel_masks = [(idx == t).astype(jnp.float32) for t in range(t_max)]

    for h in range(heads):
        s = jax.lax.dot_general(q_scr[h], k_ref[h], (((1,), (1,)), ((), ())),
                                preferred_element_type=jnp.float32) * scale
        s = s + base
        for t in range(t_max):
            s = s + rel_masks[t] * tab_ref[t, h]
        m_prev = m_scr[h]
        m_new = jnp.maximum(m_prev, jnp.max(s, axis=-1, keepdims=True))
        alpha = jnp.exp(m_prev - m_new)
        p = jnp.exp(s - m_new)
        l_scr[h] = alpha * l_scr[h] + jnp.sum(p, axis=-1, keepdims=True)
        acc_scr[h] = alpha * acc_scr[h] + jnp.dot(p.astype(jnp.bfloat16), v_ref[h],
                                                  preferred_element_type=jnp.float32)
        m_scr[h] = m_new

    @pl.when(sj == pl.num_programs(1) - 1)
    def _finish():
        y = jnp.zeros((tl, C), jnp.float32)
        for h in range(heads):
            oh = acc_scr[h] * pl.reciprocal(l_scr[h], approx=False)
            y = y + jnp.dot(oh.astype(jnp.bfloat16), wo_ref[h],
                            preferred_element_type=jnp.float32)
        y = y + bo_ref[...] + x_ref[...]
        mu = jnp.mean(y, axis=-1, keepdims=True)
        var = jnp.mean((y - mu) ** 2, axis=-1, keepdims=True)
        o_ref[...] = (y - mu) * jax.lax.rsqrt(var + eps) * g_ref[...] + b_ref[...]


def cross_block(x, wq_h, bq_h, k_h, v_h, kp_row, traj_t, traj_f, unk_t, unk_f,
                table, wo_h, bo, gamma, beta,
                *, heads, head_dim, t_max, scale, training):
    L, C = x.shape
    S = k_h.shape[1]
    Dh = head_dim
    tl = _pick_tile(L, _XROW_TILES, min_steps=2)
    ts = _pick_tile(S, _COL_TILES)
    kern = functools.partial(_cross_attn_kernel, heads=heads, head_dim=Dh,
                             t_max=t_max, scale=scale, training=training, eps=_EPS)
    return pl.pallas_call(
        kern,
        out_shape=jax.ShapeDtypeStruct((L, C), jnp.float32),
        grid=(L // tl, S // ts),
        in_specs=[
            pl.BlockSpec((tl, C), lambda i, j: (i, 0)),
            _const_spec((heads, C, Dh), lambda i, j: (0, 0, 0)),
            _const_spec((heads, 1, Dh), lambda i, j: (0, 0, 0)),
            pl.BlockSpec((heads, ts, Dh), lambda i, j: (0, j, 0)),
            pl.BlockSpec((heads, ts, Dh), lambda i, j: (0, j, 0)),
            pl.BlockSpec((1, ts), lambda i, j: (0, j)),
            pl.BlockSpec((1, ts), lambda i, j: (0, j)),
            pl.BlockSpec((1, ts), lambda i, j: (0, j)),
            pl.BlockSpec((tl, 1), lambda i, j: (i, 0)),
            pl.BlockSpec((tl, 1), lambda i, j: (i, 0)),
            pl.BlockSpec(memory_space=pltpu.MemorySpace.SMEM),   # (t_max, H) table
            _const_spec((heads, Dh, C), lambda i, j: (0, 0, 0)),
            _const_spec((1, C), lambda i, j: (0, 0)),
            _const_spec((1, C), lambda i, j: (0, 0)),
            _const_spec((1, C), lambda i, j: (0, 0)),
        ],
        out_specs=pl.BlockSpec((tl, C), lambda i, j: (i, 0)),
        scratch_shapes=[
            pltpu.VMEM((heads, tl, Dh), jnp.bfloat16),     # q (head-major)
            pltpu.VMEM((heads, tl, 1), jnp.float32),       # running max
            pltpu.VMEM((heads, tl, 1), jnp.float32),       # running denom
            pltpu.VMEM((heads, tl, Dh), jnp.float32),      # running numerator
        ],
        compiler_params=pltpu.CompilerParams(
            dimension_semantics=("parallel", "arbitrary"),
            vmem_limit_bytes=_VMEM_LIMIT),
    )(x, wq_h, bq_h, k_h, v_h, kp_row, traj_t, traj_f, unk_t, unk_f,
      table, wo_h, bo, gamma, beta)


# ---------------------------------------------------------------------------
# Self-attention block over per-frame token groups
#   - several frames per grid step, one batched einsum over (frames*heads)
#   - fused out-projection + residual + LayerNorm epilogue
# ---------------------------------------------------------------------------
def _self_attn_kernel(q_ref, k_ref, v_ref, m_ref, r_ref, wo_ref, bo_ref, g_ref, b_ref,
                      o_ref, *, heads, head_dim, scale, eps):
    tT, H, N, Dh = q_ref.shape
    C = heads * head_dim
    B = tT * heads
    q = q_ref[...].reshape(B, N, Dh)
    k = k_ref[...].reshape(B, N, Dh)
    v = v_ref[...].reshape(B, N, Dh)
    mb = m_ref[...].reshape(B, 1, N)
    s = jnp.einsum('bnd,bmd->bnm', q, k, preferred_element_type=jnp.float32) * scale
    s = s + mb
    # add_zero_attn softmax
    row_max = jnp.maximum(jnp.max(s, axis=-1, keepdims=True), 0.0)
    p = jnp.exp(s - row_max)
    denom = jnp.sum(p, axis=-1, keepdims=True) + jnp.exp(-row_max)
    o = jnp.einsum('bnm,bmd->bnd', p.astype(jnp.bfloat16), v,
                   preferred_element_type=jnp.float32)
    o = o * pl.reciprocal(denom, approx=False)
    o = o.reshape(tT, heads, N, Dh)
    # out-projection accumulated per head (head-major wo: no lane slices)
    y = jnp.zeros((tT * N, C), jnp.float32)
    for h in range(heads):
        y = y + jnp.dot(o[:, h].reshape(tT * N, Dh).astype(jnp.bfloat16), wo_ref[h],
                        preferred_element_type=jnp.float32)
    y = y + bo_ref[...] + r_ref[...].reshape(tT * N, C)
    mu = jnp.mean(y, axis=-1, keepdims=True)
    var = jnp.mean((y - mu) ** 2, axis=-1, keepdims=True)
    y = (y - mu) * jax.lax.rsqrt(var + eps) * g_ref[...] + b_ref[...]
    o_ref[...] = y.reshape(tT, N, C)


def self_block(q, k, v, mask_h, resid, wo_h, bo, gamma, beta,
               *, heads, head_dim, scale):
    T, H, N, Dh = q.shape
    C = heads * head_dim
    tT = _pick_tile(T, _FRAME_TILES, min_steps=2)
    kern = functools.partial(_self_attn_kernel, heads=heads, head_dim=Dh,
                             scale=scale, eps=_EPS)
    return pl.pallas_call(
        kern,
        out_shape=jax.ShapeDtypeStruct((T, N, C), jnp.float32),
        grid=(T // tT,),
        in_specs=[
            pl.BlockSpec((tT, H, N, Dh), lambda t: (t, 0, 0, 0)),
            pl.BlockSpec((tT, H, N, Dh), lambda t: (t, 0, 0, 0)),
            pl.BlockSpec((tT, H, N, Dh), lambda t: (t, 0, 0, 0)),
            pl.BlockSpec((tT, H, 1, N), lambda t: (t, 0, 0, 0)),
            pl.BlockSpec((tT, N, C), lambda t: (t, 0, 0)),
            _const_spec((H, Dh, C), lambda t: (0, 0, 0)),
            _const_spec((1, C), lambda t: (0, 0)),
            _const_spec((1, C), lambda t: (0, 0)),
            _const_spec((1, C), lambda t: (0, 0)),
        ],
        out_specs=pl.BlockSpec((tT, N, C), lambda t: (t, 0, 0)),
        compiler_params=pltpu.CompilerParams(
            dimension_semantics=("parallel",),
            vmem_limit_bytes=_VMEM_LIMIT),
    )(q, k, v, mask_h, resid, wo_h, bo, gamma, beta)


# ---------------------------------------------------------------------------
# Fused FFN: LayerNorm(x + W2 @ GELU(W1 @ x + b1) + b2), F tiled on the grid
# ---------------------------------------------------------------------------
def _ffn_kernel(x_ref, w1_ref, b1_ref, w2_ref, b2_ref, g_ref, bb_ref, o_ref, acc_ref,
                *, eps):
    f = pl.program_id(1)

    @pl.when(f == 0)
    def _():
        acc_ref[...] = jnp.zeros_like(acc_ref)

    h = jnp.dot(x_ref[...].astype(jnp.bfloat16), w1_ref[...],
                preferred_element_type=jnp.float32) + b1_ref[...]
    h = _gelu_tanh(h).astype(jnp.bfloat16)          # bf16 intermediate, never leaves VMEM
    acc_ref[...] += jnp.dot(h, w2_ref[...], preferred_element_type=jnp.float32)

    @pl.when(f == pl.num_programs(1) - 1)
    def _():
        y = acc_ref[...] + b2_ref[...] + x_ref[...]
        mu = jnp.mean(y, axis=-1, keepdims=True)
        var = jnp.mean((y - mu) ** 2, axis=-1, keepdims=True)
        o_ref[...] = (y - mu) * jax.lax.rsqrt(var + eps) * g_ref[...] + bb_ref[...]


def ffn_block(x, w1, b1, w2, b2, gamma, beta):
    M, C = x.shape
    F = w1.shape[1]
    tm = _pick_tile(M, _ROW_TILES, min_steps=2)
    tf = _pick_tile(F, _COL_TILES)
    kern = functools.partial(_ffn_kernel, eps=_EPS)
    return pl.pallas_call(
        kern,
        out_shape=jax.ShapeDtypeStruct((M, C), jnp.float32),
        grid=(M // tm, F // tf),
        in_specs=[
            pl.BlockSpec((tm, C), lambda i, f: (i, 0)),
            pl.BlockSpec((C, tf), lambda i, f: (0, f)),
            pl.BlockSpec((1, tf), lambda i, f: (0, f)),
            pl.BlockSpec((tf, C), lambda i, f: (f, 0)),
            _const_spec((1, C), lambda i, f: (0, 0)),
            _const_spec((1, C), lambda i, f: (0, 0)),
            _const_spec((1, C), lambda i, f: (0, 0)),
        ],
        out_specs=pl.BlockSpec((tm, C), lambda i, f: (i, 0)),
        scratch_shapes=[pltpu.VMEM((tm, C), jnp.float32)],
        compiler_params=pltpu.CompilerParams(
            dimension_semantics=("parallel", "arbitrary"),
            vmem_limit_bytes=_VMEM_LIMIT),
    )(x, w1, b1, w2, b2, gamma, beta)


# ---------------------------------------------------------------------------
# Pure-JAX references (same bf16-operand / f32-accumulate policy as the kernels)
# ---------------------------------------------------------------------------
def ref_linear(x, w, b=None, out_dtype=jnp.float32, activation=None):
    y = jnp.dot(x.astype(jnp.bfloat16), w, preferred_element_type=jnp.float32)
    if b is not None:
        y = y + b
    if activation == "gelu":
        y = _gelu_tanh(y)
    return y.astype(out_dtype)


def ref_cross_block(x, wq_h, bq_h, k_h, v_h, kp_row, traj_t, traj_f, unk_t, unk_f,
                    table, wo_h, bo, gamma, beta,
                    *, heads, head_dim, t_max, scale, training):
    L, C = x.shape
    S = k_h.shape[1]
    xb = x.astype(jnp.bfloat16)
    rel = unk_t - traj_t
    idx = jnp.where(rel < 0, rel + t_max, rel)
    base = jnp.broadcast_to(kp_row, (L, S))
    if training:
        base = base + jnp.where(traj_f > unk_f, NEG_INF, 0.0)
    y = jnp.zeros((L, C), jnp.float32)
    for h in range(heads):
        qh = (jnp.dot(xb, wq_h[h], preferred_element_type=jnp.float32)
              + bq_h[h]).astype(jnp.bfloat16)
        s = jax.lax.dot_general(qh, k_h[h], (((1,), (1,)), ((), ())),
                                preferred_element_type=jnp.float32) * scale
        s = s + base + table[:, h][idx]
        row_max = jnp.maximum(jnp.max(s, axis=-1, keepdims=True), 0.0)
        p = jnp.exp(s - row_max)
        denom = jnp.sum(p, axis=-1, keepdims=True) + jnp.exp(-row_max)
        oh = jnp.dot(p.astype(jnp.bfloat16), v_h[h],
                     preferred_element_type=jnp.float32) / denom
        y = y + jnp.dot(oh.astype(jnp.bfloat16), wo_h[h],
                        preferred_element_type=jnp.float32)
    y = y + bo + x
    return _ln2d(y, gamma, beta)


def ref_self_block(q, k, v, mask_h, resid, wo_h, bo, gamma, beta,
                   *, heads, head_dim, scale):
    T, H, N, Dh = q.shape
    C = heads * head_dim
    s = jnp.einsum('thnd,thmd->thnm', q, k, preferred_element_type=jnp.float32) * scale
    s = s + mask_h
    row_max = jnp.maximum(jnp.max(s, axis=-1, keepdims=True), 0.0)
    p = jnp.exp(s - row_max)
    denom = jnp.sum(p, axis=-1, keepdims=True) + jnp.exp(-row_max)
    o = jnp.einsum('thnm,thmd->thnd', p.astype(jnp.bfloat16), v,
                   preferred_element_type=jnp.float32) / denom
    y = jnp.zeros((T, N, C), jnp.float32)
    for h in range(heads):
        y = y + jnp.dot(o[:, h].reshape(T * N, Dh).astype(jnp.bfloat16), wo_h[h],
                        preferred_element_type=jnp.float32).reshape(T, N, C)
    y = y + bo + resid
    return _ln2d(y, gamma, beta)


def ref_ffn(x, w1, b1, w2, b2, gamma, beta):
    h = _gelu_tanh(jnp.dot(x.astype(jnp.bfloat16), w1,
                           preferred_element_type=jnp.float32) + b1)
    y = jnp.dot(h.astype(jnp.bfloat16), w2, preferred_element_type=jnp.float32) + b2
    return _ln2d(x + y, gamma, beta)


# ---------------------------------------------------------------------------
# IDDecoder forward (training-mode semantics, dropout=0 => identity)
# ---------------------------------------------------------------------------
def id_decoder_forward(params, cfg, ops,
                       traj_feats, traj_masks, traj_ids, traj_times,
                       unk_feats, unk_times, unk_ids, unk_masks,
                       training=True):
    hd = cfg["hidden_dim"]
    V = cfg["num_id_vocabulary"] + 1
    C = 2 * hd
    H = 2 * cfg["n_heads"]
    Dh = C // H
    scale = 1.0 / math.sqrt(Dh)
    Nt, Tt = traj_ids.shape
    Nu, Tu = unk_ids.shape
    S, L = Nt * Tt, Nu * Tu
    T_max = cfg["max_temporal_length"]

    lin = ops["linear"]
    xblk = ops["cross_block"]
    sblk = ops["self_block"]
    ffn = ops["ffn"]

    # id embedding lookup: one_hot(ids) @ W  ==  W[ids]  (gather instead of matmul)
    W = params["word_to_embed"]
    traj_id_emb = W[traj_ids.reshape(-1)].reshape(Nt, Tt, hd)
    unk_id_emb = W[unk_ids.reshape(-1)].reshape(Nu, Tu, hd)

    traj_flat = jnp.concatenate([traj_feats, traj_id_emb], axis=-1).reshape(S, C)
    x = jnp.concatenate([unk_feats, unk_id_emb], axis=-1).reshape(L, C)

    # O(L + S) metadata; (L, S) masks / rel-indices are (re)built inside the kernel
    kp_row = jnp.where(traj_masks.reshape(-1), NEG_INF, 0.0).astype(jnp.float32).reshape(1, S)
    traj_t = traj_times.reshape(1, S).astype(jnp.int32)
    traj_f = jnp.broadcast_to(jnp.arange(Tt, dtype=jnp.int32)[None, :], (Nt, Tt)).reshape(1, S)
    unk_t = unk_times.reshape(L, 1).astype(jnp.int32)
    unk_f = jnp.broadcast_to(jnp.arange(Tu, dtype=jnp.int32)[None, :], (Nu, Tu)).reshape(L, 1)

    # self-attn key-padding additive mask, pre-broadcast to heads: (T, H, 1, N)
    self_mask = jnp.where(unk_masks.T, NEG_INF, 0.0).astype(jnp.float32)
    self_mask_h = jnp.broadcast_to(self_mask[:, None, None, :], (Tu, H, 1, Nu))

    for l in range(cfg["n_layers"]):
        if l > 0:
            sp = params["self"][l - 1]
            xs = x.reshape(Nu, Tu, C).transpose(1, 0, 2)            # '(n t) c -> t n c'
            qkv = lin(xs.reshape(Tu * Nu, C), sp["wqkv"], sp["bqkv"],
                      out_dtype=jnp.bfloat16)                       # fused QKV, bf16 out
            qkv = qkv.reshape(Tu, Nu, 3, H, Dh)
            q = qkv[:, :, 0].transpose(0, 2, 1, 3)                  # (T, H, N, Dh)
            k = qkv[:, :, 1].transpose(0, 2, 1, 3)
            v = qkv[:, :, 2].transpose(0, 2, 1, 3)
            xs = sblk(q, k, v, self_mask_h, xs, sp["wo_h"], sp["bo"],
                      sp["norm_g"], sp["norm_b"],
                      heads=H, head_dim=Dh, scale=scale)            # attn+proj+LN fused
            x = xs.transpose(1, 0, 2).reshape(L, C)

        dp = params["dec"][l]
        kv = lin(traj_flat, dp["wkv"], dp["bkv"], out_dtype=jnp.bfloat16)   # fused K/V, bf16
        kv = kv.reshape(S, 2, H, Dh)
        k_h = kv[:, 0].transpose(1, 0, 2)                           # (H, S, Dh)
        v_h = kv[:, 1].transpose(1, 0, 2)
        x = xblk(x, dp["wq_h"], dp["bq_h"], k_h, v_h, kp_row, traj_t, traj_f,
                 unk_t, unk_f, params["rel_temporal"][l], dp["wo_h"], dp["bo"],
                 dp["norm_g"], dp["norm_b"],
                 heads=H, head_dim=Dh, t_max=T_max, scale=scale, training=training)
        x = ffn(x, dp["ffn_w1"], dp["ffn_b1"], dp["ffn_w2"], dp["ffn_b2"],
                dp["ffn_norm_g"], dp["ffn_norm_b"])

    # torch.chunk(..., 2, dim=-1)[1] -> the id-embedding half
    unk_id_part = x[:, C // 2:]
    # Shape-static embed_to_word over ALL rows (lane-dense padded vocab), then the
    # tiny data-dependent legal-row select runs eagerly at the very end.
    logits_all = lin(unk_id_part, params["embed_to_word"], None)[:, :V]
    # TODO(synk): the boolean row select is data-dependent (dynamic row count); it is
    # kept outside the kernels so everything above stays shape-static / jit-able.
    return logits_all[jnp.logical_not(unk_masks.reshape(-1))]


# ---------------------------------------------------------------------------
# Deterministic synthetic parameters (shapes from IDDecoder.__init__)
# ---------------------------------------------------------------------------
def make_params(key, cfg):
    hd = cfg["hidden_dim"]
    C = 2 * hd
    H = 2 * cfg["n_heads"]
    F = 2 * cfg["dim_feedforward"]
    V = cfg["num_id_vocabulary"] + 1
    nL = cfg["n_layers"]
    keys = iter(jax.random.split(key, 128))

    def xavier(shape):
        fan_in, fan_out = shape
        bound = math.sqrt(6.0 / (fan_in + fan_out))
        return jax.random.uniform(next(keys), shape, jnp.float32, -bound, bound)

    params = {
        "word_to_embed": xavier((V, hd)),
        "embed_to_word": xavier((hd, V)),
        # the module explicitly multiplies this Parameter by 0 at end of __init__
        "rel_temporal": jnp.zeros((nL, cfg["max_temporal_length"], H), jnp.float32),
        "dec": [],
        "self": [],
    }
    for _ in range(nL):
        params["dec"].append(dict(
            wq=xavier((C, C)), bq=jnp.zeros((C,)),
            wkv=jnp.concatenate([xavier((C, C)), xavier((C, C))], axis=1),
            bkv=jnp.zeros((2 * C,)),
            wo=xavier((C, C)), bo=jnp.zeros((C,)),
            norm_g=jnp.ones((C,)), norm_b=jnp.zeros((C,)),
            ffn_w1=xavier((C, F)), ffn_b1=jnp.zeros((F,)),
            ffn_w2=xavier((F, C)), ffn_b2=jnp.zeros((C,)),
            ffn_norm_g=jnp.ones((C,)), ffn_norm_b=jnp.zeros((C,)),
        ))
    for _ in range(nL - 1):
        params["self"].append(dict(
            wqkv=jnp.concatenate([xavier((C, C)), xavier((C, C)), xavier((C, C))],
                                 axis=1),
            bqkv=jnp.zeros((3 * C,)),
            wo=xavier((C, C)), bo=jnp.zeros((C,)),
            norm_g=jnp.ones((C,)), norm_b=jnp.zeros((C,)),
        ))
    return params


def prepare_params(raw, cfg):
    """One-time device layout prep: bf16 weights, head-major Wq/Wo, padded vocab."""
    hd = cfg["hidden_dim"]
    C = 2 * hd
    H = 2 * cfg["n_heads"]
    Dh = C // H
    F = 2 * cfg["dim_feedforward"]
    V = cfg["num_id_vocabulary"] + 1
    Vp = V + ((-V) % 128)
    bf = jnp.bfloat16

    def head_major_in(w):   # (C, C_out) -> (H, C, Dh): output columns grouped by head
        return jnp.transpose(w.reshape(C, H, Dh), (1, 0, 2)).astype(bf)

    def head_major_out(w):  # (C_in, C) -> (H, Dh, C): input rows grouped by head
        return w.reshape(H, Dh, C).astype(bf)

    p = {
        "word_to_embed": raw["word_to_embed"],
        "embed_to_word": jnp.pad(raw["embed_to_word"], ((0, 0), (0, Vp - V))).astype(bf),
        "rel_temporal": raw["rel_temporal"].astype(jnp.float32),
        "dec": [],
        "self": [],
    }
    for d in raw["dec"]:
        p["dec"].append(dict(
            wq_h=head_major_in(d["wq"]),
            bq_h=d["bq"].reshape(H, Dh)[:, None, :].astype(jnp.float32),
            wkv=d["wkv"].astype(bf), bkv=d["bkv"].reshape(1, 2 * C).astype(jnp.float32),
            wo_h=head_major_out(d["wo"]), bo=d["bo"].reshape(1, C).astype(jnp.float32),
            norm_g=d["norm_g"].reshape(1, C), norm_b=d["norm_b"].reshape(1, C),
            ffn_w1=d["ffn_w1"].astype(bf), ffn_b1=d["ffn_b1"].reshape(1, F),
            ffn_w2=d["ffn_w2"].astype(bf), ffn_b2=d["ffn_b2"].reshape(1, C),
            ffn_norm_g=d["ffn_norm_g"].reshape(1, C),
            ffn_norm_b=d["ffn_norm_b"].reshape(1, C),
        ))
    for s in raw["self"]:
        p["self"].append(dict(
            wqkv=s["wqkv"].astype(bf), bqkv=s["bqkv"].reshape(1, 3 * C).astype(jnp.float32),
            wo_h=head_major_out(s["wo"]), bo=s["bo"].reshape(1, C).astype(jnp.float32),
            norm_g=s["norm_g"].reshape(1, C), norm_b=s["norm_b"].reshape(1, C),
        ))
    return p


PALLAS_OPS = dict(linear=linear, cross_block=cross_block, self_block=self_block,
                  ffn=ffn_block)
REF_OPS = dict(linear=ref_linear, cross_block=ref_cross_block, self_block=ref_self_block,
               ffn=ref_ffn)


# ---------------------------------------------------------------------------
if __name__ == "__main__":
    cfg = dict(hidden_dim=32, dim_feedforward=64, n_heads=2, n_layers=2,
               num_id_vocabulary=50, max_temporal_length=8, dropout=0.0)
    Nt = Tt = Nu = Tu = 4
    V = cfg["num_id_vocabulary"] + 1
    hd = cfg["hidden_dim"]

    ks = iter(jax.random.split(jax.random.PRNGKey(0), 16))
    raw = make_params(next(ks), cfg)
    # Non-zero table to actually exercise the in-kernel rel-temporal bias path
    # (the module itself initializes it to zero; forward must work for any value).
    raw["rel_temporal"] = 0.02 * jax.random.normal(
        next(ks), raw["rel_temporal"].shape, jnp.float32)
    params = prepare_params(raw, cfg)

    traj_feats = jax.random.normal(next(ks), (Nt, Tt, hd), jnp.float32)
    unk_feats = jax.random.normal(next(ks), (Nu, Tu, hd), jnp.float32)
    traj_ids = jax.random.randint(next(ks), (Nt, Tt), 0, V)
    unk_ids = jax.random.randint(next(ks), (Nu, Tu), 0, V)
    traj_times = jnp.broadcast_to(jnp.arange(Tt, dtype=jnp.int32), (Nt, Tt))
    unk_times = jnp.broadcast_to(jnp.arange(Tu, dtype=jnp.int32), (Nu, Tu))
    traj_masks = jax.random.bernoulli(next(ks), 0.25, (Nt, Tt))
    unk_masks = jax.random.bernoulli(next(ks), 0.25, (Nu, Tu))
    unk_masks = unk_masks.at[0, 0].set(False)  # ensure at least one "legal" query

    out = id_decoder_forward(params, cfg, PALLAS_OPS,
                             traj_feats, traj_masks, traj_ids, traj_times,
                             unk_feats, unk_times, unk_ids, unk_masks, training=True)
    out = jax.block_until_ready(out)

    ref = id_decoder_forward(params, cfg, REF_OPS,
                             traj_feats, traj_masks, traj_ids, traj_times,
                             unk_feats, unk_times, unk_ids, unk_masks, training=True)
    ref = jax.block_until_ready(ref)

    err = float(jnp.max(jnp.abs(out - ref)))
    assert out.shape == ref.shape and err < 5e-2, f"mismatch vs reference: max|diff|={err}"
    print("KERNEL_OK")
</pallas_src>

<mosaic_0001>
module attributes {stable_mosaic.version = 11 : i64} {
  func.func @_linear_kernel(%arg0: i32, %arg1: i32, %arg2: i32, %arg3: memref<8x64xf32, #tpu.memory_space<vmem>>, %arg4: memref<64x128xbf16, #tpu.memory_space<vmem>>, %arg5: memref<1x128xf32, #tpu.memory_space<vmem>>, %arg6: memref<8x128xbf16, #tpu.memory_space<vmem>>, %arg7: memref<8x128xf32, #tpu.memory_space<vmem>>) attributes {dimension_semantics = [#tpu.dimension_semantics<parallel>, #tpu.dimension_semantics<parallel>, #tpu.dimension_semantics<arbitrary>], iteration_bounds = array<i64: 2, 1, 1>, scalar_prefetch = 0 : i64, scratch_operands = 1 : i64, tpu.core_type = #tpu.core_type<tc>, window_params = [{transform_indices = @transform_0, window_bounds = array<i64: 8, 64>}, {transform_indices = @transform_1, window_bounds = array<i64: 64, 128>}, {transform_indices = @transform_2, window_bounds = array<i64: 1, 128>}, {transform_indices = @transform_3, window_bounds = array<i64: 8, 128>}]} {
    %c0_i32 = arith.constant 0 : i32
    %0 = arith.cmpi eq, %arg2, %c0_i32 : i32
    %1 = arith.extui %0 : i1 to i32
    %c0_i32_0 = arith.constant 0 : i32
    %2 = arith.cmpi ne, %1, %c0_i32_0 : i32
    scf.if %2 {
      %cst_10 = arith.constant 0.000000e+00 : f32
      %13 = vector.broadcast %cst_10 : f32 to vector<8x128xf32>
      %c0_11 = arith.constant 0 : index
      %c0_12 = arith.constant 0 : index
      %14 = vector.load %arg7[%c0_11, %c0_12] : memref<8x128xf32, #tpu.memory_space<vmem>>, vector<8x128xf32>
      tpu.vector_store %arg7[%c0_11, %c0_12], %13 {strides = array<i32>} : memref<8x128xf32, #tpu.memory_space<vmem>>, vector<8x128xf32>,
    } else {
    }
    %c0 = arith.constant 0 : index
    %c0_1 = arith.constant 0 : index
    %3 = vector.load %arg7[%c0, %c0_1] : memref<8x128xf32, #tpu.memory_space<vmem>>, vector<8x128xf32>
    %c0_2 = arith.constant 0 : index
    %c0_3 = arith.constant 0 : index
    %4 = vector.load %arg3[%c0_2, %c0_3] : memref<8x64xf32, #tpu.memory_space<vmem>>, vector<8x64xf32>
    %5 = arith.truncf %4 : vector<8x64xf32> to vector<8x64xbf16>
    %c0_4 = arith.constant 0 : index
    %c0_5 = arith.constant 0 : index
    %6 = vector.load %arg4[%c0_4, %c0_5] : memref<64x128xbf16, #tpu.memory_space<vmem>>, vector<64x128xbf16>
    %cst = arith.constant dense<0.000000e+00> : vector<8x128xf32>
    %7 = tpu.matmul %5, %6, %cst {dimension_numbers = #tpu.dot_dimension_numbers<[1], [0], [0], [1], [0, 0, 1, 1], [], []>} : vector<8x64xbf16>, vector<64x128xbf16>, vector<8x128xf32> -> vector<8x128xf32>
    %8 = arith.addf %3, %7 : vector<8x128xf32>
    %c0_6 = arith.constant 0 : index
    %c0_7 = arith.constant 0 : index
    %9 = vector.load %arg7[%c0_6, %c0_7] : memref<8x128xf32, #tpu.memory_space<vmem>>, vector<8x128xf32>
    tpu.vector_store %arg7[%c0_6, %c0_7], %8 {strides = array<i32>} : memref<8x128xf32, #tpu.memory_space<vmem>>, vector<8x128xf32>,
    %c0_i32_8 = arith.constant 0 : i32
    %10 = arith.cmpi eq, %arg2, %c0_i32_8 : i32
    %11 = arith.extui %10 : i1 to i32
    %c0_i32_9 = arith.constant 0 : i32
    %12 = arith.cmpi ne, %11, %c0_i32_9 : i32
    scf.if %12 {
      %c0_10 = arith.constant 0 : index
      %c0_11 = arith.constant 0 : index
      %13 = vector.load %arg7[%c0_10, %c0_11] : memref<8x128xf32, #tpu.memory_space<vmem>>, vector<8x128xf32>
      %c0_12 = arith.constant 0 : index
      %c0_13 = arith.constant 0 : index
      %14 = vector.load %arg5[%c0_12, %c0_13] : memref<1x128xf32, #tpu.memory_space<vmem>>, vector<1x128xf32>
      %15 = vector.broadcast %14 : vector<1x128xf32> to vector<8x128xf32>
      %16 = arith.addf %13, %15 : vector<8x128xf32>
      %17 = arith.truncf %16 : vector<8x128xf32> to vector<8x128xbf16>
      %c0_14 = arith.constant 0 : index
      %c0_15 = arith.constant 0 : index
      %18 = vector.load %arg6[%c0_14, %c0_15] : memref<8x128xbf16, #tpu.memory_space<vmem>>, vector<8x128xbf16>
      tpu.vector_store %arg6[%c0_14, %c0_15], %17 {strides = array<i32>} : memref<8x128xbf16, #tpu.memory_space<vmem>>, vector<8x128xbf16>,
    } else {
    }
    return
  }
  func.func @transform_0(%arg0: i32, %arg1: i32, %arg2: i32) -> (i32, i32) {
    %c0_i32 = arith.constant 0 : i32
    return %arg0, %arg2 : i32, i32
  }
  func.func @transform_1(%arg0: i32, %arg1: i32, %arg2: i32) -> (i32, i32) {
    %c0_i32 = arith.constant 0 : i32
    return %arg2, %arg1 : i32, i32
  }
  func.func @transform_2(%arg0: i32, %arg1: i32, %arg2: i32) -> (i32, i32) {
    %c0_i32 = arith.constant 0 : i32
    %c0_i32_0 = arith.constant 0 : i32
    return %c0_i32, %arg1 : i32, i32
  }
  func.func @transform_3(%arg0: i32, %arg1: i32, %arg2: i32) -> (i32, i32) {
    %c0_i32 = arith.constant 0 : i32
    return %arg0, %arg1 : i32, i32
  }
}

</mosaic_0001>

<bundles_post_ra>
// kernel: tpu_custom_call.1
= control target key start
LH: loop header
LB: loop body
LE: loop exit
PB: predicated region body
PF: predicated region fallthrough
CT: control target
= control target key end

     0   :  { %8 = vsyncpa [#allocation4], 0  ;;  %s987_s0 = inlined_call_operand.hbm [shape: f32[16,64], index: 0, kind: input, shape index: {}]   ;;  %s988_s1 = inlined_call_operand.hbm [shape: bf16[64,128], index: 1, kind: input, shape index: {}]   ;;  %s989_s2 = inlined_call_operand.vmem [shape: f32[1,128], index: 2, kind: input, shape index: {}]   ;;  %s990_s3 = inlined_call_operand.hbm [shape: bf16[16,128], index: 3, kind: output, shape index: {}]  }
   0x1   :  { %10 = vsyncpa [#allocation4 + $0x1], 0 }
   0x2   :  { %11 = vsyncpa [#allocation7], 0 }
   0x3   :  { %12 = vsyncpa [#allocation5], 0 }
   0x4   :  { %14 = vsyncpa [#allocation5 + $0x1], 0  ;;  %s769_s12 = smov 0   ;;  %s771_s13 = smov 0  }
   0x5   :  { %s773_s14 = smov 0   ;;  %s775_s15 = smov 0  }
   0x6   :  { %s777_s16 = smov 0   ;;  %s779_s17 = smov 0  }
   0x7 LB: > { %s476_s18 = sadd.s32 4294967295, %s740_s17   ;;  %s477_s19 = sadd.s32 4294967294, %s740_s17   ;;  %s740_s17 = sphi %s779_s17, %s20_s17   ;;  %s736_s16 = sphi %s777_s16, %s1014_s16   ;;  %s732_s15 = sphi %s775_s15, %s1013_s15   ;;  %s728_s14 = sphi %s773_s14, %s1012_s14   ;;  %s724_s13 = sphi %s771_s13, %s1011_s13   ;;  %s720_s12 = sphi %s769_s12, %s1010_s12  }
   0x8   : > { %p61_p0 = scmp.ne.s32.totalorder %s724_s13, %s720_s12  ;;  %p803_p1 = scmp.eq.s32.totalorder %s476_s18, 0 }
   0x9   : > { %p807_p2 = scmp.eq.s32.totalorder %s476_s18, 1  ;;  %p147_p3 = scmp.eq.s32.totalorder %s477_s19, 1 }
   0xa   : > { %s995_s20 = scalar_select %p803_p1, 1, 0 }
   0xb   : > { %s996_s21 = scalar_select %p807_p2, 1, 0 }
   0xc   : > { %p813_p4 = por %p803_p1, %p61_p0  ;;  %p478_p5 = scmp.ge.s32.totalorder %s740_s17, 1 }
   0xd   : > { %p818_p6 = por %p147_p3, %p61_p0  ;;  %p154_p7 = scmp.lt.s32.totalorder %s740_s17, 3 }
   0xe   : > { %s997_s22 = scalar_select %p813_p4, 1, 0 }
   0xf   : > { %s998_s23 = scalar_select %p818_p6, 1, 0 }
  0x10   : > { %p823_p8 = pnand %p478_p5, %p154_p7  ;;  %s742_s25 = smov [#allocation6]  }
  0x11   : > { %s170_s26 = sshll.u32 %s742_s25, 4  ;;  %s39_s28 = sadd.s32 1, %s736_s16  ;;  %s171_s26 = int_to_ptr.vmem [resolvable:$true] %s170_s26 }
  0x12   : > { %s999_s24 = scalar_select %p823_p8, 1, 0 }
  0x13   : > { %p523_p9 = pneg %p823_p8  ;;  %s596_s4 = scalar_lea.hbm %s988_s1, 512 }
  0x14   : > { %p597_p12 = scmp.ne.s32.totalorder %s988_s1, %s596_s4  ;;  %p603_p5 = scmp.lt.u32.totalorder %s596_s4, %s988_s1 }
  0x15   : > { %p832_p11 = pnand %p523_p9, %p803_p1 }
  0x17   : > { %p598_p13 = pneg %p832_p11 }
  0x19   : > { %p599_p0 = pnand %p598_p13, %p597_p12 }
  0x1b   : > { %p600_p3 = pneg %p599_p0 }
  0x1d   : > { %p605_p7 = pnand %p603_p5, %p600_p3 }
  0x1f   : > { %608 = shalt.err (!%p605_p7)
}
  0x20   : > { %s609_s9 = scalar_lea.vmem %s171_s26, 512  ;;  %p617_p1 = scmp.lt.s32.totalorder %s171_s26, %s171_s26 }
  0x21   : > { %p610_p9 = scmp.ne.s32.totalorder %s171_s26, %s609_s9  ;;  %p618_p4 = scmp.lt.s32.totalorder %s609_s9, %s609_s9 }
  0x23   : > { %p612_p10 = pnand %p610_p9, %p598_p13  ;;  %p619_p8 = por %p618_p4, %p617_p1 }
  0x25   : > { %p613_p6 = pneg %p612_p10 }
  0x27   : > { %p620_p2 = pnand %p619_p8, %p613_p6 }
  0x29   : > { %623 = shalt.err (!%p620_p2)
}
  0x2a   : > { %s743_s10 = smov 64   ;;  %s744_s11 = smov 4  }
  0x2b   : > { %526 = dma.hbm_to_vmem [thread:$0]  (!%p832_p11), %s988_s1, 512, %s171_s26, [#allocation7], %s743_s10, %s743_s10, %s744_s11  }
  0x2c   : > { %p41_p1 = scmp.ge.s32.totalorder %s39_s28, 2  ;;  %s48_s25 = sadd.s32 1, %s728_s14 }
  0x2d   : > { %p55_p2 = scmp.ne.s32.totalorder %s728_s14, %s724_s13  ;;  %p56_p4 = scmp.eq.s32.totalorder %s740_s17, 0 }
  0x2e   : > { %s1016_s28 = smov (%p41_p1, %s39_s28), 0  ;;  %p1002_p8 = scmp.ne.s32.totalorder %s996_s21, 0 }
  0x2f   : > { %p859_p6 = por %p56_p4, %p55_p2  ;;  %s43_s27 = ssub.s32 %s736_s16, %s1016_s28 }
  0x30   : > { %p865_p10 = por %p1002_p8, %p55_p2  ;;  %p536_p12 = scmp.lt.s32.totalorder %s740_s17, 2 }
  0x31   : > { %p46_p11 = scmp.eq.s32.totalorder %s43_s27, 0  ;;  %s190_s26 = sand.u32 1, %s728_s14  }
  0x32   : > { %s482_s4 = sshll.u32 %s190_s26, 3  ;;  %s483_s6 = sshll.u32 %s736_s16, 7 }
  0x33   : > { %s874_s5 = scalar_select %p46_p11, %s728_s14, %s48_s25  }
  0x34   : > { %s880_s9 = scalar_lea.hbm %s987_s0, %s483_s6  ;;  %s194_s21 = scalar_lea.vmem [#allocation3], %s482_s4 }
  0x35   : > { %s202_s10 = sshll.u32 %s194_s21, 4  ;;  %p886_p13 = pnand %p536_p12, %p859_p6  ;;  %s882_s10 = int_to_ptr.vmem [resolvable:$true] %s202_s10 }
  0x36   : > { %s191_s18 = scalar_lea.sflag [#allocation4], %s190_s26  ;;  %s624_s19 = scalar_lea.hbm %s880_s9, 128 }
  0x37   : > { %p625_p0 = scmp.ne.s32.totalorder %s880_s9, %s624_s19  ;;  %p626_p3 = pneg %p886_p13 }
  0x38   : > { %s629_s4 = scalar_lea.hbm %s987_s0, 256  ;;  %p630_p9 = scmp.lt.u32.totalorder %s880_s9, %s987_s0 }
  0x39   : > { %p627_p5 = pnand %p626_p3, %p625_p0  ;;  %p631_p1 = scmp.lt.u32.totalorder %s629_s4, %s624_s19 }
  0x3a   : > { %p633_p4 = scmp.lt.u32.totalorder %s624_s19, %s880_s9 }
  0x3b   : > { %p628_p7 = pneg %p627_p5  ;;  %p632_p2 = por %p631_p1, %p630_p9 }
  0x3d   : > { %p634_p6 = por %p633_p4, %p632_p2 }
  0x3f   : > { %p635_p8 = pnand %p634_p6, %p628_p7 }
  0x41   : > { %638 = shalt.err (!%p635_p8)
}
  0x42   : > { %s639_s26 = scalar_lea.vmem %s882_s10, 128  ;;  %s745_s7 = smov [#allocation3]  }
  0x43   : > { %p640_p12 = scmp.ne.s32.totalorder %s882_s10, %s639_s26  ;;  %s644_s8 = sshll.u32 %s745_s7, 4  ;;  %s645_s8 = int_to_ptr.vmem [resolvable:$false] %s644_s8 }
  0x44   : > { %s646_s21 = scalar_lea.vmem %s645_s8, 256  ;;  %p647_p5 = scmp.lt.s32.totalorder %s882_s10, %s645_s8 }
  0x45   : > { %p642_p11 = pnand %p640_p12, %p626_p3  ;;  %p648_p9 = scmp.lt.s32.totalorder %s646_s21, %s639_s26 }
  0x47   : > { %p643_p0 = pneg %p642_p11  ;;  %p649_p1 = por %p648_p9, %p647_p5 }
  0x49   : > { %p650_p2 = pnand %p649_p1, %p643_p0 }
  0x4b   : > { %653 = shalt.err (!%p650_p2)
}
  0x4c   : > { %530 = dma.hbm_to_vmem [thread:$0]  (!%p886_p13), %s880_s9, 128, %s882_s10, %s191_s18  }
  0x4d   : > { %p1005_p7 = scmp.ne.s32.totalorder %s999_s24, 0 }
  0x4e   : > { %s918_s19 = sand.u32 (!%p1005_p7), 1, %s724_s13   ;;  %p1006_p3 = scmp.ne.s32.totalorder (!%p1005_p7), %s997_s22, 0 }
  0x4f   : > { %211 = sbr.rel (%p1005_p7) target bundleno = 337 (0x151), region = 32  ;;  %s485_s25 = sshll.u32 (!%p1005_p7), %s918_s19, 3 }
  0x50   : > { %s214_s27 = scalar_lea.sflag (!%p1005_p7), [#allocation4], %s918_s19  ;;  %s217_s4 = scalar_lea.vmem (!%p1005_p7), [#allocation3], %s485_s25 }
  0x56   : > { %707 = dma.done.wait (%p1006_p3), %s214_s27, 128  }
  0x57   : > { %709 = vsyncadd (%p1006_p3), %s214_s27, 4294967168  ;;  %p1007_p4 = scmp.ne.s32.totalorder %s995_s20, 0 }
  0x59   : > { %711 = dma.done.wait (%p1007_p4), [#allocation7], 512  }
  0x5a   : > { %713 = vsyncadd (%p1007_p4), [#allocation7], 4294966784  ;;  %v746_v0 = vmov 0.0   ;;  %vm747_vm0 = vmmov 0   ;;  %v592_v1 = vld [vmem:[#allocation6] sm:$0xff]   ;;  %v593_v2 = vld [vmem:[#allocation6 + $0x8] sm:$0xff]  }
  0x5b   : > { %503 = vmatprep.subr.bf16.mxu0 %v746_v0  ;;  %511 = vmatprep.mubr.msk.bf16.mxu0 %vm747_vm0, %v746_v0  ;;  %v594_v3 = vld [vmem:[#allocation6 + $0x10] sm:$0xff]   ;;  %v595_v4 = vld [vmem:[#allocation6 + $0x18] sm:$0xff]   ;;  %vm292_vm1 = vcmask 523264   ;;  %s487_s20 = sshll.u32 %s918_s19, 2  ;;  %s495_s9 = sshll.u32 %s732_s15, 6 }
  0x5c   : > { %504 = vmatpush3.bf16.msra.mxu0 %v592_v1  ;;  %v258_v5 = vld [vmem:[%s217_s4] sm:$0xff]  ;;  %s246_s10 = scalar_lea.vmem [#allocation8], %s487_s20  ;;  %s938_s6 = scalar_lea.hbm %s990_s3, %s495_s9 }
  0x5d   : > { %505 = vmatprep.subr.bf16.mxu0 %v746_v0  ;;  %v259_v6 = vpack.c.bf16 %v258_v5, %v258_v5  ;;  %v493_v7 = vld [vmem:[%s989_s2] ss:$0 sm:$0xff]  ;;  %s367_s11 = sshll.u32 %s246_s10, 4  ;;  %s353_s26 = scalar_lea.sflag [#allocation5], %s918_s19  ;;  %s940_s11 = int_to_ptr.vmem [resolvable:$true] %s367_s11 }
  0x5e   : > { %s654_s15 = scalar_lea.vmem %s940_s11, 64  ;;  %s748_s7 = smov [#allocation8]  }
  0x5f   : > { %p655_p13 = scmp.ne.s32.totalorder %s940_s11, %s654_s15  ;;  %s658_s8 = sshll.u32 %s748_s7, 4  ;;  %s659_s8 = int_to_ptr.vmem [resolvable:$false] %s658_s8 }
  0x60   : > { %506 = vmatpush3.bf16.msra.mxu0 %v593_v2  ;;  %s660_s21 = scalar_lea.vmem %s659_s8, 128  ;;  %p661_p12 = scmp.lt.s32.totalorder %s940_s11, %s659_s8 }
  0x61   : > { %507 = vmatprep.subr.bf16.mxu0 %v746_v0  ;;  %p656_p6 = pnand %p655_p13, %p865_p10  ;;  %p662_p11 = scmp.lt.s32.totalorder %s660_s21, %s654_s15 }
  0x63   : > { %p657_p8 = pneg %p656_p6  ;;  %p663_p0 = por %p662_p11, %p661_p12 }
  0x64   : > { %508 = vmatpush3.bf16.msra.mxu0 %v594_v3 }
  0x65   : > { %509 = vmatprep.subr.bf16.mxu0 %v746_v0  ;;  %p664_p5 = pnand %p663_p0, %p657_p8 }
  0x68   : > { %510 = vmatpush3.bf16.msra.mxu0 %v595_v4 }
  0x6b   : > { %512 = vmatmul.mubr.msk.bf16.vlgmr.msra.gmra.mrb[0].mxu0 %vm292_vm1, %v259_v6 }
 0x13e   : > { %v330_v8 = vpop.f32.mrb[0].mxu0 }
 0x13f   : > { %v349_v9 = vadd.f32 %v493_v7, %v330_v8  ;;  %v513_v10 = vpop.f32.mrb[1].mxu0 }
 0x140   : > { %v333_v11 = vpop.f32.mrb[2].mxu0 }
 0x141   : > { %v350_v12 = vpack.c.bf16 %v349_v9, %v349_v9  ;;  %v514_v13 = vpop.f32.mrb[3].mxu0 }
 0x143   : > { %351 = vst [vmem:[%s246_s10] sm:$0xf] %v350_v12 }
 0x144   : > { %667 = shalt.err (!%p664_p5)
}
 0x145   : > { %s668_s19 = scalar_lea.hbm %s938_s6, 64  ;;  %s672_s4 = scalar_lea.hbm %s990_s3, 128 }
 0x146   : > { %p669_p9 = scmp.ne.s32.totalorder %s938_s6, %s668_s19  ;;  %p673_p7 = scmp.lt.u32.totalorder %s938_s6, %s990_s3 }
 0x147   : > { %p674_p3 = scmp.lt.u32.totalorder %s672_s4, %s668_s19  ;;  %p676_p13 = scmp.lt.u32.totalorder %s668_s19, %s938_s6 }
 0x148   : > { %p670_p1 = pnand %p669_p9, %p865_p10 }
 0x149   : > { %p675_p4 = por %p674_p3, %p673_p7 }
 0x14a   : > { %p671_p2 = pneg %p670_p1 }
 0x14b   : > { %p677_p6 = por %p676_p13, %p675_p4 }
 0x14d   : > { %p678_p8 = pnand %p677_p6, %p671_p2 }
 0x14f   : > { %681 = shalt.err (!%p678_p8)
}
 0x150   : > { %521 = dma.vmem_to_hbm [thread:$0]  (%p865_p10), %s940_s11, 64, %s938_s6, %s353_s26  }
 0x151 PF: > { %s379_s24 = sand.u32 1, %s720_s12   ;;  %p1008_p12 = scmp.ne.s32.totalorder %s998_s23, 0 }
 0x152   : > { %p1009_p11 = scmp.ge.s32.totalorder %s740_s17, 2  ;;  %s380_s9 = scalar_lea.sflag [#allocation5], %s379_s24 }
 0x154   : > { %p532_p0 = pnand %p1009_p11, %p1008_p12 }
 0x156   : > { %715 = dma.done.wait (!%p532_p0), %s380_s9, 64  }
 0x157   : > { %717 = vsyncadd (!%p532_p0), %s380_s9, 4294967232  ;;  %s20_s17 = sadd.s32 1, %s740_s17   ;;  %s1010_s12 = smov %s724_s13 }
 0x158   : > { %p17_p5 = scmp.ge.s32.totalorder %s20_s17, 4   ;;  %s1011_s13 = smov %s728_s14 }
 0x159   : > { %s1012_s14 = smov %s874_s5  ;;  %s1013_s15 = smov %s736_s16 }
 0x15a   : > { %s1014_s16 = smov %s1016_s28  ;;  %19 = sbr.rel (!%p17_p5) target bundleno = 7 (0x7), region = 93 }
 0x161   :  { %385 = vsyncpa [#allocation4], 1 }
 0x162   :  { %387 = vsyncpa [#allocation4 + $0x1], 1 }
 0x163   :  { %388 = vsyncpa [#allocation7], 1 }
 0x164   :  { %389 = vsyncpa [#allocation5], 1 }
 0x165   :  { %391 = vsyncpa [#allocation5 + $0x1], 1 }

</bundles_post_ra>
